<compile_context>
chip_gen: v6e
topology: v6e:2x2x1
jax: 0.10.0
libtpu: 0.0.40
codegen_flags: <defaults>
</compile_context>

<pallas_src>
import functools

import jax
import jax.numpy as jnp
import numpy as np
from jax import lax
from jax.experimental import pallas as pl
from jax.experimental.pallas import tpu as pltpu


def _cdiv(a, b):
    return -(-a // b)


def _round_up(a, b):
    return _cdiv(a, b) * b


def _device_kind():
    try:
        return jax.devices()[0].device_kind.lower()
    except Exception:
        return ""


def _mean_filter_kernel(x_ref, o_ref, *, k):
    # x_ref: (Nb, Hp, Lp)  zero-padded, lane-packed planes: S stripes of width
    #        Wp = W + 2p each (halos included), input dtype.
    # o_ref: (Nb, H,  Lo)  Lo = Lp - 2p; stripe j's W valid output columns sit
    #        at lanes [j*Wp, j*Wp + W).
    p = k // 2
    _, Hp, Lp = x_ref.shape
    H = Hp - 2 * p
    Lo = Lp - 2 * p

    # Single upcast of the whole block.
    xv = x_ref[...].astype(jnp.float32)

    # Row pass: k shifted adds along the lane axis.  Per-stripe halos keep
    # every shift (<= 2p) inside its own stripe, so no masking is needed.
    row = xv[:, :, 0:Lo]
    for d in range(1, k):
        row = row + xv[:, :, d:d + Lo]

    # Column pass: k shifted adds along the sublane (H) axis, fed directly
    # from the traced row-pass value (no scratch round-trip).
    acc = row[:, 0:H, :]
    for d in range(1, k):
        acc = acc + row[:, d:d + H, :]

    o_ref[...] = (acc * (1.0 / float(k * k))).astype(o_ref.dtype)


def _pick_stripes(N, Wp):
    """How many planes to pack side-by-side along the 128-wide lane axis."""
    cap = max(1, min(N, 128 // Wp))
    # Prefer an exact divisor of N (no padded planes) when close to the cap.
    best_div = max((d for d in range(1, cap + 1) if N % d == 0), default=1)
    return best_div if 2 * best_div >= cap else cap


def _pick_block_planes(Ng, Hp, Lp, H, Lo, itemsize, is_v7):
    """#(packed super-planes) per grid step, padded-(8,128)-tile accounting."""
    in_b = _round_up(Hp, 8) * _round_up(Lp, 128) * itemsize
    out_b = _round_up(H, 8) * _round_up(Lo, 128) * itemsize
    f32_b = (_round_up(Hp, 8) * _round_up(Lp, 128)      # upcast block
             + _round_up(Hp, 8) * _round_up(Lo, 128)    # row-pass value
             + _round_up(H, 8) * _round_up(Lo, 128)) * 4  # accumulator
    per_plane = 2 * (in_b + out_b) + f32_b               # double-buffered I/O + temps
    budget = (10 << 20) if is_v7 else (24 << 20)
    nb = max(1, min(Ng, budget // max(per_plane, 1)))
    if is_v7 and Ng >= 2:
        # 2 TensorCores per chip: keep at least 2 grid steps for megacore sharding.
        nb = min(nb, max(1, Ng // 2))
    return nb, per_plane


def mean_filter(x, kernel_size):
    """Depthwise mean (box) filter with padding = kernel_size // 2.

    Matches the PyTorch MeanFilter module for odd kernel_size (even k would
    change the conv2d output shape, so it is rejected explicitly)."""
    assert kernel_size % 2 == 1, (
        "mean_filter Pallas kernel supports odd kernel_size only "
        "(even k changes the PyTorch conv2d output shape).")

    B, C, H, W = x.shape
    k = kernel_size
    p = k // 2
    Hp, Wp = H + 2 * p, W + 2 * p
    N = B * C
    dtype = x.dtype
    itemsize = jnp.dtype(dtype).itemsize
    is_v7 = "v7" in _device_kind()

    # ---- lane-dense packing (pure XLA layout plumbing) -----------------
    S = _pick_stripes(N, Wp)
    Ng = _cdiv(N, S)
    x3 = x.reshape(N, H, W)
    if Ng * S != N:
        x3 = jnp.pad(x3, ((0, Ng * S - N), (0, 0), (0, 0)))
    x4 = x3.reshape(Ng, S, H, W)
    x4 = jnp.pad(x4, ((0, 0), (0, 0), (p, p), (p, p)))      # fold in conv zero-pad
    xp = x4.transpose(0, 2, 1, 3).reshape(Ng, Hp, S * Wp)   # (Ng, Hp, Lp)

    Lp = S * Wp
    Lo = Lp - 2 * p

    Nb, per_plane = _pick_block_planes(Ng, Hp, Lp, H, Lo, itemsize, is_v7)
    Ng2 = _cdiv(Ng, Nb) * Nb
    if Ng2 != Ng:
        xp = jnp.pad(xp, ((0, Ng2 - Ng), (0, 0), (0, 0)))
    grid = (Ng2 // Nb,)

    vmem_need = Nb * per_plane
    vmem_cap = (44 << 20) if is_v7 else (96 << 20)
    vmem_limit = int(min(max(vmem_need + (4 << 20), 16 << 20), vmem_cap))

    kernel = functools.partial(_mean_filter_kernel, k=k)

    out_p = pl.pallas_call(
        kernel,
        out_shape=jax.ShapeDtypeStruct((Ng2, H, Lo), dtype),
        grid=grid,
        in_specs=[pl.BlockSpec((Nb, Hp, Lp), lambda i: (i, 0, 0))],
        out_specs=pl.BlockSpec((Nb, H, Lo), lambda i: (i, 0, 0)),
        compiler_params=pltpu.CompilerParams(
            dimension_semantics=("parallel",),
            vmem_limit_bytes=vmem_limit),
    )(xp)

    # ---- unpack: stripe j's valid columns sit at lanes [j*Wp, j*Wp+W) ----
    out_p = out_p[:Ng]
    out_p = jnp.pad(out_p, ((0, 0), (0, 0), (0, 2 * p)))     # width back to S*Wp
    out5 = out_p.reshape(Ng, H, S, Wp)[..., :W]              # (Ng, H, S, W)
    out3 = out5.transpose(0, 2, 1, 3).reshape(Ng * S, H, W)[:N]
    return out3.reshape(B, C, H, W)


def _reference_mean_filter(x, kernel_size):
    """Pure-JAX reference: depthwise conv with a ones/k^2 kernel."""
    B, C, H, W = x.shape
    p = kernel_size // 2
    w = jnp.full((C, 1, kernel_size, kernel_size),
                 1.0 / (kernel_size ** 2), dtype=x.dtype)
    return lax.conv_general_dilated(
        x, w,
        window_strides=(1, 1),
        padding=[(p, p), (p, p)],
        dimension_numbers=("NCHW", "OIHW", "NCHW"),
        feature_group_count=C,
    )


if __name__ == "__main__":
    # MeanFilter(kernel_size=3) — no learned parameters.
    kernel_size = 3

    key = jax.random.PRNGKey(0)
    x = jax.random.normal(key, (2, 4, 16, 16), dtype=jnp.float32)

    out = mean_filter(x, kernel_size)
    out = jax.block_until_ready(out)

    ref = _reference_mean_filter(x, kernel_size)
    np.testing.assert_allclose(np.asarray(out), np.asarray(ref),
                               rtol=1e-5, atol=1e-5)

    print("KERNEL_OK")
</pallas_src>

<mosaic_0001>
module attributes {stable_mosaic.version = 11 : i64} {
  func.func @_mean_filter_kernel(%arg0: i32, %arg1: memref<2x18x72xf32, #tpu.memory_space<vmem>>, %arg2: memref<2x16x70xf32, #tpu.memory_space<vmem>>) attributes {dimension_semantics = [#tpu.dimension_semantics<parallel>], iteration_bounds = array<i64: 1>, scalar_prefetch = 0 : i64, scratch_operands = 0 : i64, tpu.core_type = #tpu.core_type<tc>, window_params = [{transform_indices = @transform_0, window_bounds = array<i64: 2, 18, 72>}, {transform_indices = @transform_1, window_bounds = array<i64: 2, 16, 70>}]} {
    %c0 = arith.constant 0 : index
    %c0_0 = arith.constant 0 : index
    %c0_1 = arith.constant 0 : index
    %0 = vector.load %arg1[%c0, %c0_0, %c0_1] : memref<2x18x72xf32, #tpu.memory_space<vmem>>, vector<2x18x72xf32>
    %1 = vector.extract_strided_slice %0 {offsets = [0, 0, 0], sizes = [2, 18, 70], strides = [1, 1, 1]} : vector<2x18x72xf32> to vector<2x18x70xf32>
    %2 = vector.extract_strided_slice %0 {offsets = [0, 0, 1], sizes = [2, 18, 70], strides = [1, 1, 1]} : vector<2x18x72xf32> to vector<2x18x70xf32>
    %3 = arith.addf %1, %2 : vector<2x18x70xf32>
    %4 = vector.extract_strided_slice %0 {offsets = [0, 0, 2], sizes = [2, 18, 70], strides = [1, 1, 1]} : vector<2x18x72xf32> to vector<2x18x70xf32>
    %5 = arith.addf %3, %4 : vector<2x18x70xf32>
    %6 = vector.extract_strided_slice %5 {offsets = [0, 0, 0], sizes = [2, 16, 70], strides = [1, 1, 1]} : vector<2x18x70xf32> to vector<2x16x70xf32>
    %7 = vector.extract_strided_slice %5 {offsets = [0, 1, 0], sizes = [2, 16, 70], strides = [1, 1, 1]} : vector<2x18x70xf32> to vector<2x16x70xf32>
    %8 = arith.addf %6, %7 : vector<2x16x70xf32>
    %9 = vector.extract_strided_slice %5 {offsets = [0, 2, 0], sizes = [2, 16, 70], strides = [1, 1, 1]} : vector<2x18x70xf32> to vector<2x16x70xf32>
    %10 = arith.addf %8, %9 : vector<2x16x70xf32>
    %cst = arith.constant 0.111111112 : f32
    %11 = vector.broadcast %cst : f32 to vector<2x16x70xf32>
    %12 = arith.mulf %10, %11 : vector<2x16x70xf32>
    %c0_2 = arith.constant 0 : index
    %c0_3 = arith.constant 0 : index
    %c0_4 = arith.constant 0 : index
    %13 = vector.load %arg2[%c0_2, %c0_3, %c0_4] : memref<2x16x70xf32, #tpu.memory_space<vmem>>, vector<2x16x70xf32>
    tpu.vector_store %arg2[%c0_2, %c0_3, %c0_4], %12 {strides = array<i32>} : memref<2x16x70xf32, #tpu.memory_space<vmem>>, vector<2x16x70xf32>,
    return
  }
  func.func @transform_0(%arg0: i32) -> (i32, i32, i32) {
    %c0_i32 = arith.constant 0 : i32
    %c0_i32_0 = arith.constant 0 : i32
    %c0_i32_1 = arith.constant 0 : i32
    return %arg0, %c0_i32, %c0_i32_0 : i32, i32, i32
  }
  func.func @transform_1(%arg0: i32) -> (i32, i32, i32) {
    %c0_i32 = arith.constant 0 : i32
    %c0_i32_0 = arith.constant 0 : i32
    %c0_i32_1 = arith.constant 0 : i32
    return %arg0, %c0_i32, %c0_i32_0 : i32, i32, i32
  }
}

</mosaic_0001>

<bundles_post_ra>
// kernel: tpu_custom_call.1
= control target key start
LH: loop header
LB: loop body
LE: loop exit
PB: predicated region body
PF: predicated region fallthrough
CT: control target
= control target key end

     0   :  { %s165_s10 = smov 127   ;;  %s213_s0 = inlined_call_operand.vmem [shape: f32[2,18,72], index: 0, kind: input, shape index: {}]   ;;  %s214_s1 = inlined_call_operand.hbm [shape: f32[2,16,70], index: 1, kind: output, shape index: {}]  }
   0x1   :  { %v11_v0 = vld [vmem:[%s213_s0 + $0x10] sm:$0x3]  ;;  %v9_v1 = vld [vmem:[%s213_s0] sm:$0xff]  ;;  %v12_v2 = vld [vmem:[%s213_s0 + $0x18] sm:$0xff] }
   0x2   :  { %25 = vrot.lane.b32.xlu1 %v11_v0, %s165_s10  ;;  %21 = vrot.lane.b32.xlu0 %v9_v1, %s165_s10  ;;  %v10_v3 = vld [vmem:[%s213_s0 + $0x8] sm:$0xff] }
   0x3   :  { %6 = vsyncpa [#allocation3], 0  ;;  %v14_v4 = vld [vmem:[%s213_s0 + $0x28] sm:$0x3]  ;;  %v13_v5 = vld [vmem:[%s213_s0 + $0x20] sm:$0xff]  ;;  %s166_s19 = smov 126  }
   0x4   :  { %vm75_vm0 = vcmask 1046528   ;;  %vm94_vm1 = vcmask 1045504   ;;  %vm117_vm2 = vcmask 572416   ;;  %s167_s0 = smov [#allocation2]  }
   0x5   :  { %s127_s20 = sshll.u32 %s167_s0, 4  ;;  %s128_s20 = int_to_ptr.vmem [resolvable:$true] %s127_s20 }
   0x6   :  { %27 = vrot.lane.b32.xlu1 %v12_v2, %s165_s10  ;;  %23 = vrot.lane.b32.xlu0 %v10_v3, %s165_s10  ;;  %s143_s21 = scalar_lea.vmem %s128_s20, 512  ;;  %p148_p1 = scmp.lt.s32.totalorder %s128_s20, %s128_s20 }
   0x7   :  { %p144_p0 = scmp.ne.s32.totalorder %s128_s20, %s143_s21  ;;  %p149_p2 = scmp.lt.s32.totalorder %s143_s21, %s143_s21 }
   0x9   :  { %p150_p3 = por %p149_p2, %p148_p1 }
   0xa   :  { %31 = vrot.lane.b32.xlu1 %v14_v4, %s165_s10  ;;  %29 = vrot.lane.b32.xlu0 %v13_v5, %s165_s10 }
   0xb   :  { %p151_p4 = pnand %p150_p3, %p144_p0 }
   0xe   :  { %47 = vrot.lane.b32.xlu1 %v10_v3, %s166_s19  ;;  %45 = vrot.lane.b32.xlu0 %v9_v1, %s166_s19 }
  0x12   :  { %51 = vrot.lane.b32.xlu1 %v12_v2, %s166_s19  ;;  %49 = vrot.lane.b32.xlu0 %v11_v0, %s166_s19 }
  0x16   :  { %55 = vrot.lane.b32.xlu1 %v14_v4, %s166_s19  ;;  %53 = vrot.lane.b32.xlu0 %v13_v5, %s166_s19 }
  0x74   :  { %v26_v6 = vpop.permute.xlu1 %25  ;;  %v22_v7 = vpop.permute.xlu0 %21 }
  0x75   :  { %v39_v12 = vadd.f32 %v22_v7, %v9_v1  ;;  %v41_v18 = vadd.f32 %v26_v6, %v11_v0 }
  0x78   :  { %v28_v8 = vpop.permute.xlu1 %27  ;;  %v24_v9 = vpop.permute.xlu0 %23 }
  0x79   :  { %v40_v13 = vadd.f32 %v24_v9, %v10_v3  ;;  %v42_v23 = vadd.f32 %v28_v8, %v12_v2 }
  0x7c   :  { %v32_v10 = vpop.permute.xlu1 %31  ;;  %v30_v11 = vpop.permute.xlu0 %29 }
  0x7d   :  { %v44_v28 = vadd.f32 %v32_v10, %v14_v4  ;;  %v43_v31 = vadd.f32 %v30_v11, %v13_v5 }
  0x80   :  { %v48_v14 = vpop.permute.xlu1 %47  ;;  %v46_v15 = vpop.permute.xlu0 %45 }
  0x81   :  { %v64_v16 = vadd.f32 %v48_v14, %v40_v13  ;;  %v63_v17 = vadd.f32 %v46_v15, %v39_v12 }
  0x83   :  { %v77_v19 = vrot.slane %v64_v16, 1  ;;  %v96_v20 = vrot.slane %v64_v16, 2  ;;  %v76_v21 = vrot.slane %v63_v17, 1  ;;  %v95_v22 = vrot.slane %v63_v17, 2 }
  0x84   :  { %v52_v24 = vpop.permute.xlu1 %51  ;;  %v50_v25 = vpop.permute.xlu0 %49 }
  0x85   :  { %v78_v26 = vsel %vm75_vm0, %v76_v21, %v77_v19  ;;  %v65_v27 = vadd.f32 %v50_v25, %v41_v18  ;;  %v66_v30 = vadd.f32 %v52_v24, %v42_v23  ;;  %v97_v32 = vsel %vm94_vm1, %v95_v22, %v96_v20 }
  0x86   :  { %v90_v29 = vadd.f32 %v78_v26, %v63_v17 }
  0x87   :  { %v79_v33 = vrot.slane %v65_v27, 1  ;;  %v98_v34 = vrot.slane %v65_v27, 2  ;;  %v81_v42 = vrot.slane %v66_v30, 1  ;;  %v100_v50 = vrot.slane %v66_v30, 2 }
  0x88   :  { %v109_v35 = vadd.f32 %v97_v32, %v90_v29  ;;  %v56_v36 = vpop.permute.xlu1 %55  ;;  %v54_v37 = vpop.permute.xlu0 %53 }
  0x89   :  { %v80_v38 = vsel %vm75_vm0, %v77_v19, %v79_v33  ;;  %v68_v39 = vadd.f32 %v56_v36, %v44_v28  ;;  %v67_v40 = vadd.f32 %v54_v37, %v43_v31  ;;  %v99_v44 = vsel %vm94_vm1, %v96_v20, %v98_v34 }
  0x8a   :  { %v113_v41 = vmul.f32 0.11111111, %v109_v35  ;;  %v91_v43 = vadd.f32 %v80_v38, %v64_v16 }
  0x8b   :  { %v84_v45 = vrot.slane %v68_v39, 1  ;;  %v103_v46 = vrot.slane %v68_v39, 2  ;;  %v82_v47 = vrot.slane %v67_v40, 1  ;;  %v101_v48 = vrot.slane %v67_v40, 2 }
  0x8c   :  { %118 = vst.msk [vmem:[#allocation2] sm:$0xff] %vm117_vm2, %v113_v41  ;;  %v110_v49 = vadd.f32 %v99_v44, %v91_v43 }
  0x8d   :  { %v83_v51 = vsel %vm75_vm0, %v81_v42, %v82_v47  ;;  %v85_v52 = vsel %vm75_vm0, %v82_v47, %v84_v45  ;;  %v102_v56 = vsel %vm94_vm1, %v100_v50, %v101_v48  ;;  %v104_v57 = vsel %vm94_vm1, %v101_v48, %v103_v46 }
  0x8e   :  { %v114_v53 = vmul.f32 0.11111111, %v110_v49  ;;  %v92_v54 = vadd.f32 %v83_v51, %v66_v30  ;;  %v93_v55 = vadd.f32 %v85_v52, %v67_v40 }
  0x90   :  { %119 = vst.msk [vmem:[#allocation2 + $0x8] sm:$0xff] %vm117_vm2, %v114_v53  ;;  %v111_v58 = vadd.f32 %v102_v56, %v92_v54  ;;  %v112_v59 = vadd.f32 %v104_v57, %v93_v55 }
  0x92   :  { %v115_v60 = vmul.f32 0.11111111, %v111_v58  ;;  %v116_v61 = vmul.f32 0.11111111, %v112_v59 }
  0x94   :  { %120 = vst.msk [vmem:[#allocation2 + $0x10] sm:$0xff] %vm117_vm2, %v115_v60  ;;  %121 = vst.msk [vmem:[#allocation2 + $0x18] sm:$0xff] %vm117_vm2, %v116_v61 }
  0x95   :  { %154 = shalt.err (!%p151_p4)
}
  0x96   :  { %s168_s22 = smov 128   ;;  %s169_s23 = smov 8  }
  0x97   :  { %133 = dma.vmem_to_hbm [thread:$0]  %s128_s20, 512, %s214_s1, [#allocation3], %s168_s22, %s168_s22, %s169_s23  }
  0x98   :  { %163 = dma.done.wait [#allocation3], 512  }
  0x99   :  { %164 = vsyncadd [#allocation3], 4294966784 }
  0x9a   :  { %137 = vsyncpa [#allocation3], 1 }

</bundles_post_ra>
